<compile_context>
chip_gen: v6e
topology: v6e:2x2x1
jax: 0.10.0
libtpu: 0.0.40
codegen_flags: <defaults>
</compile_context>

<pallas_src>
import jax
import jax.numpy as jnp
from jax.experimental import pallas as pl
from jax.experimental.pallas import tpu as pltpu

C_IN = 3
C_MID = 16
C_OUT = 32


def _fused_kernel(x_ref, w1_ref, b1_ref, w2_ref, b2_ref, o_ref):
    # x_ref : (Nb, C_IN, TS)     w1_ref: (C_MID, C_IN)   b1_ref: (C_MID, 1)
    # w2_ref: (C_OUT, C_MID)     b2_ref: (C_OUT, 1)      o_ref : (Nb, C_OUT, TS)
    w1 = w1_ref[...]
    w2 = w2_ref[...]
    b1 = b1_ref[...]
    b2 = b2_ref[...]
    # Hoist the (grid-invariant) weight-column slices once.
    w1c0 = w1[:, 0:1]
    w1c1 = w1[:, 1:2]
    w1c2 = w1[:, 2:3]

    nb = x_ref.shape[0]
    for b in range(nb):  # static unroll; Nb is small by construction
        xb = x_ref[b]                       # (C_IN, TS)
        # First 1x1 conv: K=3 is far too small for the MXU -> 3 VPU broadcast-FMAs.
        h = w1c0 * xb[0:1, :]
        h = h + w1c1 * xb[1:2, :]
        h = h + w1c2 * xb[2:3, :]
        h = jnp.tanh(h + b1)                # (C_MID, TS), f32
        # Second 1x1 conv on the MXU: (C_OUT, C_MID) @ (C_MID, TS).
        y = jnp.dot(w2, h, preferred_element_type=jnp.float32)
        o_ref[b] = (y + b2).astype(o_ref.dtype)


def fused_conv1x1_tanh_conv1x1(x_nchw, w1, b1, w2, b2, *, max_tile=32768,
                               target_lanes=8192):
    """x_nchw: (N, 3, H, W) f32; w1: (16, 3); b1: (16,); w2: (32, 16); b2: (32,).

    Returns (N, 32, H, W) f32.
    """
    N, C, H, W = x_nchw.shape
    assert C == C_IN
    S = H * W

    # Spatial tile cap must be a multiple of 128 (lane width).
    max_tile = max(128, (max_tile // 128) * 128)

    if S > max_tile:
        # Big images: one batch image per step, spatial tiled at a 128-aligned cap.
        # The ragged last spatial tile is handled by Pallas's implicit store masking.
        nb, ts = 1, max_tile
    else:
        # Small/medium images: full spatial extent per step (block last dim == array dim),
        # fold batches so each step carries >= target_lanes lanes of work.
        ts = S
        nb = max(1, min(N, pl.cdiv(target_lanes, S)))
        # Keep at least 2 grid steps when N >= 2 so v7x's second TensorCore gets work.
        if N >= 2 and nb >= N:
            nb = max(1, N // 2)

    grid = (pl.cdiv(N, nb), pl.cdiv(S, ts))

    # Pure reshapes (no HBM transpose / copy): spatial on the lane axis.
    x_rows = x_nchw.reshape(N, C_IN, S)
    b1_2d = b1.reshape(C_MID, 1)
    b2_2d = b2.reshape(C_OUT, 1)

    out = pl.pallas_call(
        _fused_kernel,
        out_shape=jax.ShapeDtypeStruct((N, C_OUT, S), jnp.float32),
        grid_spec=pltpu.PrefetchScalarGridSpec(
            num_scalar_prefetch=0,
            grid=grid,
            in_specs=[
                pl.BlockSpec((nb, C_IN, ts), lambda n, s: (n, 0, s)),
                pl.BlockSpec((C_MID, C_IN), lambda n, s: (0, 0)),
                pl.BlockSpec((C_MID, 1), lambda n, s: (0, 0)),
                pl.BlockSpec((C_OUT, C_MID), lambda n, s: (0, 0)),
                pl.BlockSpec((C_OUT, 1), lambda n, s: (0, 0)),
            ],
            out_specs=pl.BlockSpec((nb, C_OUT, ts), lambda n, s: (n, 0, s)),
        ),
        compiler_params=pltpu.CompilerParams(
            dimension_semantics=("parallel", "parallel"),
            # ~21 MiB worst case with double-buffered 4 MiB output blocks + intermediates;
            # give headroom above the 32 MiB scoped default while staying < v7x's 64 MiB.
            vmem_limit_bytes=48 * 1024 * 1024,
        ),
    )(x_rows, w1, b1_2d, w2, b2_2d)

    return out.reshape(N, C_OUT, H, W)


def _reference(x_nchw, w1, b1, w2, b2):
    # Pure-JAX reference of the same math (1x1 convs as channel matmuls, NCHW).
    h = jnp.einsum("oc,nchw->nohw", w1, x_nchw) + b1[None, :, None, None]
    h = jnp.tanh(h)
    y = jnp.einsum("oc,nchw->nohw", w2, h) + b2[None, :, None, None]
    return y


if __name__ == "__main__":
    key = jax.random.PRNGKey(0)
    k_x, k_w1, k_b1, k_w2, k_b2 = jax.random.split(key, 5)

    # Deterministic fan-in-uniform init (PyTorch Conv2d default), weights in
    # PyTorch (out_c, in_c) convention for 1x1 kernels.
    bound1 = 1.0 / (C_IN ** 0.5)
    w1 = jax.random.uniform(k_w1, (C_MID, C_IN), jnp.float32, -bound1, bound1)
    b1 = jax.random.uniform(k_b1, (C_MID,), jnp.float32, -bound1, bound1)
    bound2 = 1.0 / (C_MID ** 0.5)
    w2 = jax.random.uniform(k_w2, (C_OUT, C_MID), jnp.float32, -bound2, bound2)
    b2 = jax.random.uniform(k_b2, (C_OUT,), jnp.float32, -bound2, bound2)

    # Exercise all three tiling paths at small shapes:
    #   1) small image, batch-folded path; 2) the module's nominal 100x100 spatial size
    #   (single full-extent tile); 3) forced spatial tiling with a ragged last tile.
    checks = [
        ((2, C_IN, 16, 16), 32768),
        ((1, C_IN, 100, 100), 32768),
        ((1, C_IN, 100, 100), 4096),
    ]
    for shape, mt in checks:
        kx = jax.random.fold_in(k_x, shape[0] * 1000 + shape[2])
        x = jax.random.normal(kx, shape, dtype=jnp.float32)
        out = jax.block_until_ready(
            fused_conv1x1_tanh_conv1x1(x, w1, b1, w2, b2, max_tile=mt))
        ref = jax.block_until_ready(_reference(x, w1, b1, w2, b2))
        assert out.shape == ref.shape, (out.shape, ref.shape)
        assert jnp.allclose(out, ref, atol=1e-4, rtol=1e-4), \
            f"mismatch vs reference for shape={shape}, max_tile={mt}"

    print("KERNEL_OK")
</pallas_src>

<mosaic_0001>
module attributes {stable_mosaic.version = 11 : i64} {
  func.func @_fused_kernel(%arg0: i32, %arg1: i32, %arg2: memref<1x3x256xf32, #tpu.memory_space<vmem>>, %arg3: memref<16x3xf32, #tpu.memory_space<vmem>>, %arg4: memref<16x1xf32, #tpu.memory_space<vmem>>, %arg5: memref<32x16xf32, #tpu.memory_space<vmem>>, %arg6: memref<32x1xf32, #tpu.memory_space<vmem>>, %arg7: memref<1x32x256xf32, #tpu.memory_space<vmem>>) attributes {dimension_semantics = [#tpu.dimension_semantics<parallel>, #tpu.dimension_semantics<parallel>], iteration_bounds = array<i64: 2, 1>, scalar_prefetch = 0 : i64, scratch_operands = 0 : i64, tpu.core_type = #tpu.core_type<tc>, window_params = [{transform_indices = @transform_0, window_bounds = array<i64: 1, 3, 256>}, {pipeline_mode = #tpu.pipeline_mode<synchronous>, transform_indices = @transform_1, window_bounds = array<i64: 16, 3>}, {pipeline_mode = #tpu.pipeline_mode<synchronous>, transform_indices = @transform_2, window_bounds = array<i64: 16, 1>}, {pipeline_mode = #tpu.pipeline_mode<synchronous>, transform_indices = @transform_3, window_bounds = array<i64: 32, 16>}, {pipeline_mode = #tpu.pipeline_mode<synchronous>, transform_indices = @transform_4, window_bounds = array<i64: 32, 1>}, {transform_indices = @transform_5, window_bounds = array<i64: 1, 32, 256>}]} {
    %c0 = arith.constant 0 : index
    %c0_0 = arith.constant 0 : index
    %0 = vector.load %arg3[%c0, %c0_0] : memref<16x3xf32, #tpu.memory_space<vmem>>, vector<16x3xf32>
    %c0_1 = arith.constant 0 : index
    %c0_2 = arith.constant 0 : index
    %1 = vector.load %arg5[%c0_1, %c0_2] : memref<32x16xf32, #tpu.memory_space<vmem>>, vector<32x16xf32>
    %c0_3 = arith.constant 0 : index
    %c0_4 = arith.constant 0 : index
    %2 = vector.load %arg4[%c0_3, %c0_4] : memref<16x1xf32, #tpu.memory_space<vmem>>, vector<16x1xf32>
    %c0_5 = arith.constant 0 : index
    %c0_6 = arith.constant 0 : index
    %3 = vector.load %arg6[%c0_5, %c0_6] : memref<32x1xf32, #tpu.memory_space<vmem>>, vector<32x1xf32>
    %4 = vector.extract_strided_slice %0 {offsets = [0, 0], sizes = [16, 1], strides = [1, 1]} : vector<16x3xf32> to vector<16x1xf32>
    %5 = vector.extract_strided_slice %0 {offsets = [0, 1], sizes = [16, 1], strides = [1, 1]} : vector<16x3xf32> to vector<16x1xf32>
    %6 = vector.extract_strided_slice %0 {offsets = [0, 2], sizes = [16, 1], strides = [1, 1]} : vector<16x3xf32> to vector<16x1xf32>
    %c0_7 = arith.constant 0 : index
    %c0_8 = arith.constant 0 : index
    %c0_9 = arith.constant 0 : index
    %7 = vector.load %arg2[%c0_7, %c0_8, %c0_9] : memref<1x3x256xf32, #tpu.memory_space<vmem>>, vector<1x3x256xf32>
    %8 = vector.shape_cast %7 : vector<1x3x256xf32> to vector<3x256xf32>
    %9 = vector.extract_strided_slice %8 {offsets = [0, 0], sizes = [1, 256], strides = [1, 1]} : vector<3x256xf32> to vector<1x256xf32>
    %10 = vector.broadcast %4 : vector<16x1xf32> to vector<16x256xf32>
    %11 = vector.broadcast %9 : vector<1x256xf32> to vector<16x256xf32>
    %12 = arith.mulf %10, %11 : vector<16x256xf32>
    %13 = vector.extract_strided_slice %8 {offsets = [1, 0], sizes = [1, 256], strides = [1, 1]} : vector<3x256xf32> to vector<1x256xf32>
    %14 = vector.broadcast %5 : vector<16x1xf32> to vector<16x256xf32>
    %15 = vector.broadcast %13 : vector<1x256xf32> to vector<16x256xf32>
    %16 = arith.mulf %14, %15 : vector<16x256xf32>
    %17 = arith.addf %12, %16 : vector<16x256xf32>
    %18 = vector.extract_strided_slice %8 {offsets = [2, 0], sizes = [1, 256], strides = [1, 1]} : vector<3x256xf32> to vector<1x256xf32>
    %19 = vector.broadcast %6 : vector<16x1xf32> to vector<16x256xf32>
    %20 = vector.broadcast %18 : vector<1x256xf32> to vector<16x256xf32>
    %21 = arith.mulf %19, %20 : vector<16x256xf32>
    %22 = arith.addf %17, %21 : vector<16x256xf32>
    %23 = vector.broadcast %2 : vector<16x1xf32> to vector<16x256xf32>
    %24 = arith.addf %22, %23 : vector<16x256xf32>
    %25 = math.tanh %24 : vector<16x256xf32>
    %cst = arith.constant dense<0.000000e+00> : vector<32x256xf32>
    %26 = tpu.matmul %1, %25, %cst {dimension_numbers = #tpu.dot_dimension_numbers<[1], [0], [0], [1], [0, 0, 1, 1], [], []>} : vector<32x16xf32>, vector<16x256xf32>, vector<32x256xf32> -> vector<32x256xf32>
    %27 = vector.broadcast %3 : vector<32x1xf32> to vector<32x256xf32>
    %28 = arith.addf %26, %27 : vector<32x256xf32>
    %c0_10 = arith.constant 0 : index
    %c0_11 = arith.constant 0 : index
    %c0_12 = arith.constant 0 : index
    %29 = vector.load %arg7[%c0_10, %c0_11, %c0_12] : memref<1x32x256xf32, #tpu.memory_space<vmem>>, vector<1x32x256xf32>
    %30 = vector.shape_cast %29 : vector<1x32x256xf32> to vector<32x256xf32>
    %31 = vector.shape_cast %28 : vector<32x256xf32> to vector<1x32x256xf32>
    tpu.vector_store %arg7[%c0_10, %c0_11, %c0_12], %31 {strides = array<i32>} : memref<1x32x256xf32, #tpu.memory_space<vmem>>, vector<1x32x256xf32>,
    return
  }
  func.func @transform_0(%arg0: i32, %arg1: i32) -> (i32, i32, i32) {
    %c0_i32 = arith.constant 0 : i32
    %c0_i32_0 = arith.constant 0 : i32
    return %arg0, %c0_i32, %arg1 : i32, i32, i32
  }
  func.func @transform_1(%arg0: i32, %arg1: i32) -> (i32, i32) {
    %c0_i32 = arith.constant 0 : i32
    %c0_i32_0 = arith.constant 0 : i32
    %c0_i32_1 = arith.constant 0 : i32
    return %c0_i32, %c0_i32_0 : i32, i32
  }
  func.func @transform_2(%arg0: i32, %arg1: i32) -> (i32, i32) {
    %c0_i32 = arith.constant 0 : i32
    %c0_i32_0 = arith.constant 0 : i32
    %c0_i32_1 = arith.constant 0 : i32
    return %c0_i32, %c0_i32_0 : i32, i32
  }
  func.func @transform_3(%arg0: i32, %arg1: i32) -> (i32, i32) {
    %c0_i32 = arith.constant 0 : i32
    %c0_i32_0 = arith.constant 0 : i32
    %c0_i32_1 = arith.constant 0 : i32
    return %c0_i32, %c0_i32_0 : i32, i32
  }
  func.func @transform_4(%arg0: i32, %arg1: i32) -> (i32, i32) {
    %c0_i32 = arith.constant 0 : i32
    %c0_i32_0 = arith.constant 0 : i32
    %c0_i32_1 = arith.constant 0 : i32
    return %c0_i32, %c0_i32_0 : i32, i32
  }
  func.func @transform_5(%arg0: i32, %arg1: i32) -> (i32, i32, i32) {
    %c0_i32 = arith.constant 0 : i32
    %c0_i32_0 = arith.constant 0 : i32
    return %arg0, %c0_i32, %arg1 : i32, i32, i32
  }
}

</mosaic_0001>

<bundles_post_ra>
// kernel: tpu_custom_call.1
= control target key start
LH: loop header
LB: loop body
LE: loop exit
PB: predicated region body
PF: predicated region fallthrough
CT: control target
= control target key end

     0   :  { %10 = vsyncpa [#allocation3], 0  ;;  %s984_s0 = inlined_call_operand.vmem [shape: f32[2,3,256], index: 0, kind: input, shape index: {}]   ;;  %s985_s1 = inlined_call_operand.vmem [shape: f32[16,3], index: 1, kind: input, shape index: {}]   ;;  %s986_s2 = inlined_call_operand.vmem [shape: f32[16,1], index: 2, kind: input, shape index: {}]   ;;  %s987_s3 = inlined_call_operand.vmem [shape: f32[32,16], index: 3, kind: input, shape index: {}]   ;;  %s988_s4 = inlined_call_operand.vmem [shape: f32[32,1], index: 4, kind: input, shape index: {}]   ;;  %s989_s5 = inlined_call_operand.hbm [shape: f32[2,32,256], index: 5, kind: output, shape index: {}]  }
   0x1   :  { %12 = vsyncpa [#allocation3 + $0x1], 0  ;;  %s826_s18 = smov 0   ;;  %s828_s19 = smov 0  }
   0x2   :  { %s830_s20 = smov 0   ;;  %s832_s21 = smov 0  }
   0x3   :  { %s834_s22 = smov 0   ;;  %s836_s23 = smov 0  }
   0x4 LB: > { %s611_s24 = sadd.s32 4294967295, %s787_s23   ;;  %s612_s25 = sadd.s32 4294967294, %s787_s23   ;;  %s787_s23 = sphi %s836_s23, %s18_s23   ;;  %s783_s22 = sphi %s834_s22, %s996_s22   ;;  %s779_s21 = sphi %s832_s21, %s995_s21   ;;  %s775_s20 = sphi %s830_s20, %s994_s20   ;;  %s771_s19 = sphi %s828_s19, %s993_s19   ;;  %s767_s18 = sphi %s826_s18, %s992_s18  }
   0x5   : > { %s30_s26 = sadd.s32 1, %s783_s22  ;;  %s151_s27 = sadd.s32 1, %s775_s20 }
   0x6   : > { %p32_p0 = scmp.ge.s32.totalorder %s30_s26, 2  ;;  %p161_p1 = scmp.ne.s32.totalorder %s775_s20, %s771_s19 }
   0x7   : > { %p162_p2 = scmp.eq.s32.totalorder %s611_s24, 1  ;;  %p167_p3 = scmp.ne.s32.totalorder %s771_s19, %s767_s18 }
   0x8   : > { %s998_s26 = smov (%p32_p0, %s30_s26), 0  ;;  %p168_p5 = scmp.eq.s32.totalorder %s612_s25, 1 }
   0x9   : > { %p866_p4 = por %p162_p2, %p161_p1  ;;  %s146_s29 = ssub.s32 %s783_s22, %s998_s26 }
   0xa   : > { %p615_p6 = scmp.ge.s32.totalorder %s787_s23, 1  ;;  %p149_p7 = scmp.eq.s32.totalorder %s146_s29, 0 }
   0xb   : > { %p873_p8 = por %p168_p5, %p167_p3  ;;  %p211_p9 = scmp.lt.s32.totalorder %s787_s23, 3 }
   0xc   : > { %s879_s6 = scalar_select %p149_p7, %s775_s20, %s151_s27  }
   0xd   : > { %p212_p10 = pnand %p615_p6, %p211_p9 }
   0xe   : > { %p244_p11 = scmp.lt.s32.totalorder (!%p212_p10), %s779_s21, 1  ;;  %s240_s29 = sand.u32 (!%p212_p10), 1, %s771_s19  }
   0xf   : > { %215 = sbr.rel (%p212_p10) target bundleno = 399 (0x18f), region = 40  ;;  %s616_s7 = sshll.u32 (!%p212_p10), %s240_s29, 6 }
  0x10   : > { %s793_s15 = smov (!%p212_p10), [#allocation2]  }
  0x11   : > { %s715_s16 = sshll.u32 (!%p212_p10), %s793_s15, 4  ;;  %s716_s16 = int_to_ptr.vmem [resolvable:$false] %s715_s16 }
  0x12   : > { %s717_s17 = scalar_lea.vmem (!%p212_p10), %s716_s16, 2048 }
  0x14   : > { %v255_v0 = vld [vmem:[%s985_s1 + $0x8] sm:$0xff]  ;;  %v254_v1 = vld [vmem:[%s985_s1] sm:$0xff]  ;;  %v789_v2 = vmov 0   ;;  %v790_v3 = vmov 1   ;;  %v791_v4 = vmov 2   ;;  %v264_v8 = vld [vmem:[%s988_s4 + $0x10] sm:$0xff]  ;;  %v278_v12 = vlaneseq }
  0x15   : > { %697 = vset.pattern.permute.xlu1 %v789_v2  ;;  %695 = vset.pattern.permute.xlu0 %v789_v2  ;;  %v261_v5 = vld [vmem:[%s986_s2 + $0x8] sm:$0xff]  ;;  %v260_v6 = vld [vmem:[%s986_s2] sm:$0xff]  ;;  %v792_v9 = vmov 0.0   ;;  %v265_v11 = vld [vmem:[%s988_s4 + $0x18] sm:$0xff]  ;;  %s245_s8 = scalar_select %p244_p11, %s779_s21, 1  ;;  %vm406_vm0 = vcmask 130048  }
  0x16   : > { %274 = vperm.xlu0 %695, %v255_v0   ;;  %269 = vperm.xlu1 %697, %v254_v1   ;;  %v263_v7 = vld [vmem:[%s988_s4 + $0x8] sm:$0xff]  ;;  %v262_v10 = vld [vmem:[%s988_s4] sm:$0xff]  ;;  %v279_v13 = vshrl.u32 %v278_v12, 7 }
  0x17   : > { %483 = vmatprep.mubr.f32.mxu0 %v792_v9  ;;  %495 = vmatprep.mubr.f32.mxu1 %v792_v9  ;;  %s628_s9 = sshll.u32 %s245_s8, 3  ;;  %s242_s8 = scalar_lea.vmem [#allocation2], %s616_s7 }
  0x18   : > { %s251_s12 = scalar_lea.vmem %s984_s0, %s628_s9  ;;  %v310_v14 = vsub.s32 1, %v279_v13  ;;  %v314_v15 = vsub.s32 5, %v279_v13  ;;  %v280_v16 = vsub.s32 0, %v279_v13  ;;  %v284_v17 = vsub.s32 4, %v279_v13  ;;  %s629_s9 = sshll.u32 %s779_s21, 10 }
  0x19   : > { %v266_v18 = vld [vmem:[%s251_s12] sm:$0x77]  ;;  %v344_v19 = vsub.s32 2, %v279_v13  ;;  %v348_v20 = vsub.s32 6, %v279_v13  ;;  %s532_s10 = sshll.u32 %s242_s8, 4  ;;  %s933_s13 = scalar_lea.hbm %s989_s5, %s629_s9  ;;  %s935_s10 = int_to_ptr.vmem [resolvable:$true] %s532_s10 }
  0x1a   : > { %696 = vset.pattern.permute.xlu0 %v790_v3  ;;  %698 = vset.pattern.permute.xlu1 %v790_v3  ;;  %v311_v21 = vrot.slane %v266_v18, %v310_v14  ;;  %v315_v22 = vrot.slane %v266_v18, %v314_v15  ;;  %v281_v25 = vrot.slane %v266_v18, %v280_v16  ;;  %s939_s21 = scalar_lea.sflag [#allocation3], %s240_s29  ;;  %s711_s14 = scalar_lea.vmem %s935_s10, 1024 }
  0x1b   : > { %305 = vperm.xlu0 %696, %v255_v0   ;;  %301 = vperm.xlu1 %698, %v254_v1   ;;  %v285_v26 = vrot.slane %v266_v18, %v284_v17  ;;  %v345_v27 = vrot.slane %v266_v18, %v344_v19  ;;  %v349_v28 = vrot.slane %v266_v18, %v348_v20  ;;  %p712_p12 = scmp.ne.s32.totalorder %s935_s10, %s711_s14  ;;  %p718_p1 = scmp.lt.s32.totalorder %s935_s10, %s716_s16 }
  0x1c   : > { %v321_v29 = vrot.slane %v311_v21, %v310_v14  ;;  %v325_v30 = vrot.slane %v315_v22, %v310_v14  ;;  %v291_v31 = vrot.slane %v281_v25, %v280_v16  ;;  %p719_p2 = scmp.lt.s32.totalorder %s717_s17, %s711_s14 }
  0x1d   : > { %v295_v32 = vrot.slane %v285_v26, %v280_v16  ;;  %v355_v35 = vrot.slane %v345_v27, %v344_v19  ;;  %v359_v36 = vrot.slane %v349_v28, %v344_v19  ;;  %p713_p13 = pnand %p712_p12, %p866_p4 }
  0x1e   : > { %p720_p3 = por %p719_p2, %p718_p1 }
  0x1f   : > { %700 = vset.pattern.permute.xlu0 %v791_v4  ;;  %699 = vset.pattern.permute.xlu1 %v791_v4  ;;  %p714_p0 = pneg %p713_p13 }
  0x20   : > { %335 = vperm.xlu0 %700, %v254_v1   ;;  %339 = vperm.xlu1 %699, %v255_v0  }
  0x21   : > { %p721_p5 = pnand %p720_p3, %p714_p0 }
  0x24   : > { %701 = vset.pattern.permute.xlu1 %v789_v2  ;;  %702 = vset.pattern.permute.xlu0 %v789_v2 }
  0x25   : > { %375 = vperm.xlu1 %701, %v261_v5   ;;  %388 = vperm.xlu0 %702, %v262_v10   ;;  %v256_v5 = vld [vmem:[%s987_s3] sm:$0xff] }
  0x29   : > { %370 = vperm.xlu1 %701, %v260_v6   ;;  %403 = vperm.xlu0 %702, %v265_v11   ;;  %v258_v6 = vld [vmem:[%s987_s3 + $0x10] sm:$0xff] }
  0x2d   : > { %393 = vperm.xlu1 %701, %v263_v7   ;;  %v257_v7 = vld [vmem:[%s987_s3 + $0x8] sm:$0xff] }
  0x31   : > { %398 = vperm.xlu1 %701, %v264_v8   ;;  %v259_v8 = vld [vmem:[%s987_s3 + $0x18] sm:$0xff] }
  0x91   : > { %v270_v23 = vpop.permute.xlu1 %269  ;;  %v275_v24 = vpop.permute.xlu0 %274 }
  0x92   : > { %v298_v37 = vmul.f32 %v291_v31, %v275_v24  ;;  %v299_v38 = vmul.f32 %v295_v32, %v275_v24  ;;  %v296_v51 = vmul.f32 %v291_v31, %v270_v23  ;;  %v297_v52 = vmul.f32 %v295_v32, %v270_v23 }
  0x96   : > { %v306_v33 = vpop.permute.xlu0 %305  ;;  %v302_v34 = vpop.permute.xlu1 %301 }
  0x97   : > { %v328_v39 = vmul.f32 %v321_v29, %v306_v33  ;;  %v329_v40 = vmul.f32 %v325_v30, %v306_v33  ;;  %v326_v47 = vmul.f32 %v321_v29, %v302_v34  ;;  %v327_v48 = vmul.f32 %v325_v30, %v302_v34 }
  0x99   : > { %v332_v42 = vadd.f32 %v328_v39, %v298_v37  ;;  %v333_v43 = vadd.f32 %v329_v40, %v299_v38  ;;  %v330_v56 = vadd.f32 %v326_v47, %v296_v51  ;;  %v331_v57 = vadd.f32 %v327_v48, %v297_v52 }
  0x9b   : > { %v340_v41 = vpop.permute.xlu1 %339  ;;  %v336_v44 = vpop.permute.xlu0 %335 }
  0x9c   : > { %v362_v45 = vmul.f32 %v355_v35, %v340_v41  ;;  %v363_v46 = vmul.f32 %v359_v36, %v340_v41  ;;  %v360_v53 = vmul.f32 %v355_v35, %v336_v44  ;;  %v361_v54 = vmul.f32 %v359_v36, %v336_v44 }
  0x9e   : > { %v366_v49 = vadd.f32 %v362_v45, %v332_v42  ;;  %v367_v50 = vadd.f32 %v363_v46, %v333_v43  ;;  %v364_v60 = vadd.f32 %v360_v53, %v330_v56  ;;  %v365_v61 = vadd.f32 %v361_v54, %v331_v57 }
  0xa0   : > { %v376_v55 = vpop.permute.xlu1 %375  ;;  %v389_v11 = vpop.permute.xlu0 %388 }
  0xa1   : > { %v380_v58 = vadd.f32 %v376_v55, %v366_v49  ;;  %v381_v59 = vadd.f32 %v376_v55, %v367_v50 }
  0xa3   : > { %703 = vtanh.f32 %v380_v58 }
  0xa4   : > { %705 = vtanh.f32 %v381_v59  ;;  %v371_v62 = vpop.permute.xlu1 %370  ;;  %v404_v18 = vpop.permute.xlu0 %403 }
  0xa5   : > { %v378_v63 = vadd.f32 %v371_v62, %v364_v60  ;;  %v379_v0 = vadd.f32 %v371_v62, %v365_v61 }
  0xa7   : > { %707 = vtanh.f32 %v378_v63 }
  0xa8   : > { %709 = vtanh.f32 %v379_v0  ;;  %v394_v10 = vpop.permute.xlu1 %393 }
  0xac   : > { %v399_v12 = vpop.permute.xlu1 %398 }
  0xb0   : > { %v704_v1 = vpop.eup %703 }
  0xb1   : > { %v706_v2 = vpop.eup %705 }
  0xb2   : > { %447 = vmatprep.subr.mxu0 %v706_v2  ;;  %630 = vmatprep.subr.mxu1 %v706_v2 }
  0xb3   : > { %448 = vmatpush1.msra.mxu0 %v704_v1  ;;  %632 = vmatpush1.msra.mxu1 %v704_v1 }
  0xb4   : > { %v708_v3 = vpop.eup %707 }
  0xb5   : > { %v710_v4 = vpop.eup %709 }
  0xb6   : > { %449 = vmatprep.subr.mxu0 %v710_v4  ;;  %631 = vmatprep.subr.mxu1 %v710_v4 }
  0xb7   : > { %450 = vmatpush1.msra.mxu0 %v708_v3  ;;  %633 = vmatpush1.msra.mxu1 %v708_v3 }
  0xb8   : > { %619 = vmatmul.mubr.msk.f32.vlgmr.msra.gmra.mxu0 %vm406_vm0, %v256_v5  ;;  %621 = vmatmul.mubr.msk.f32.vlgmr.msra.gmra.mxu1 %vm406_vm0, %v258_v6 }
  0xb9   : > { %489 = vmatprep.mubr.f32.mxu0 %v792_v9  ;;  %501 = vmatprep.mubr.f32.mxu1 %v792_v9 }
  0xbc   : > { %620 = vmatmul.mubr.msk.f32.gmra.mxu0 %vm406_vm0, %v257_v7  ;;  %622 = vmatmul.mubr.msk.f32.gmra.mxu1 %vm406_vm0, %v259_v8 }
 0x178   : > { %v485_v13 = vpop.f32.mrf.mxu0  ;;  %v497_v14 = vpop.f32.mrf.mxu1 }
 0x179   : > { %v486_v9 = vadd.f32 %v485_v13, %v389_v11  ;;  %v498_v15 = vadd.f32 %v497_v14, %v399_v12 }
 0x17a   : > { %v487_v16 = vpop.f32.mrf.mxu0  ;;  %v499_v17 = vpop.f32.mrf.mxu1 }
 0x17b   : > { %508 = vst [vmem:[%s242_s8] sm:$0xff] %v486_v9  ;;  %512 = vst [vmem:[%s242_s8 + $0x20] sm:$0xff] %v498_v15  ;;  %v488_v19 = vadd.f32 %v487_v16, %v389_v11  ;;  %v500_v20 = vadd.f32 %v499_v17, %v399_v12 }
 0x17c   : > { %v491_v21 = vpop.f32.mrf.mxu0  ;;  %v503_v22 = vpop.f32.mrf.mxu1 }
 0x17d   : > { %509 = vst [vmem:[%s242_s8 + $0x8] sm:$0xff] %v488_v19  ;;  %513 = vst [vmem:[%s242_s8 + $0x28] sm:$0xff] %v500_v20  ;;  %v492_v23 = vadd.f32 %v491_v21, %v394_v10  ;;  %v504_v24 = vadd.f32 %v503_v22, %v404_v18 }
 0x17e   : > { %v493_v25 = vpop.f32.mrf.mxu0  ;;  %v505_v26 = vpop.f32.mrf.mxu1 }
 0x17f   : > { %510 = vst [vmem:[%s242_s8 + $0x10] sm:$0xff] %v492_v23  ;;  %514 = vst [vmem:[%s242_s8 + $0x30] sm:$0xff] %v504_v24  ;;  %v494_v27 = vadd.f32 %v493_v25, %v394_v10  ;;  %v506_v28 = vadd.f32 %v505_v26, %v404_v18 }
 0x181   : > { %511 = vst [vmem:[%s242_s8 + $0x18] sm:$0xff] %v494_v27  ;;  %515 = vst [vmem:[%s242_s8 + $0x38] sm:$0xff] %v506_v28 }
 0x182   : > { %724 = shalt.err (!%p721_p5)
}
 0x183   : > { %s725_s24 = scalar_lea.hbm %s933_s13, 1024  ;;  %s729_s29 = scalar_lea.hbm %s989_s5, 2048 }
 0x184   : > { %p726_p6 = scmp.ne.s32.totalorder %s933_s13, %s725_s24  ;;  %p730_p10 = scmp.lt.s32.totalorder %s933_s13, %s989_s5 }
 0x185   : > { %p731_p11 = scmp.lt.s32.totalorder %s729_s29, %s725_s24 }
 0x186   : > { %p727_p7 = pnand %p726_p6, %p866_p4 }
 0x187   : > { %p732_p12 = por %p731_p11, %p730_p10 }
 0x188   : > { %p728_p9 = pneg %p727_p7 }
 0x18a   : > { %p733_p13 = pnand %p732_p12, %p728_p9 }
 0x18c   : > { %736 = shalt.err (!%p733_p13)
}
 0x18d   : > { %s794_s9 = smov 256   ;;  %s795_s11 = smov 16  }
 0x18e   : > { %634 = dma.vmem_to_hbm [thread:$0]  (%p866_p4), %s935_s10, 1024, %s933_s13, %s939_s21, %s794_s9, %s794_s9, %s795_s11  }
 0x18f PF: > { %p640_p0 = scmp.ge.s32.totalorder %s787_s23, 2  ;;  %s547_s12 = sand.u32 1, %s767_s18  }
 0x190   : > { %s548_s14 = scalar_lea.sflag [#allocation3], %s547_s12 }
 0x191   : > { %p637_p1 = pnand %p640_p0, %p873_p8 }
 0x193   : > { %p638_p2 = pneg %p637_p1 }
 0x195   : > { %762 = dma.done.wait (%p638_p2), %s548_s14, 1024  }
 0x196   : > { %764 = vsyncadd (%p638_p2), %s548_s14, 4294966272  ;;  %s18_s23 = sadd.s32 1, %s787_s23   ;;  %s992_s18 = smov %s771_s19 }
 0x197   : > { %p15_p3 = scmp.ge.s32.totalorder %s18_s23, 4   ;;  %s993_s19 = smov %s775_s20 }
 0x198   : > { %s994_s20 = smov %s879_s6  ;;  %s995_s21 = smov %s783_s22 }
 0x199   : > { %s996_s22 = smov %s998_s26  ;;  %17 = sbr.rel (!%p15_p3) target bundleno = 4 (0x4), region = 75 }
 0x19e   :  { %553 = vsyncpa [#allocation3], 1 }
 0x19f   :  { %555 = vsyncpa [#allocation3 + $0x1], 1 }

</bundles_post_ra>
